<compile_context>
chip_gen: v5e
topology: v5e:2x2
jax: 0.10.0
libtpu: 0.0.40
codegen_flags: <defaults>
</compile_context>

<pallas_src>
import jax
import jax.numpy as jnp
import numpy as np
from jax import lax
from jax.experimental import pallas as pl
from jax.experimental.pallas import tpu as pltpu


def _round_up(x, m):
    return (x + m - 1) // m * m


def _vmem_limit_bytes():
    # Generation-aware scoped-VMEM limit (v7x: 64 MiB physical, v5e/v6e: 128 MiB).
    try:
        cap = int(getattr(pltpu.get_tpu_info(), "vmem_capacity_bytes", 128 << 20))
    except Exception:
        cap = 128 << 20
    return int(min(max(cap * 3 // 4, 32 << 20), 96 << 20))


def _pick_pass1_tile(dhw, kp, coutp, budget):
    """Largest MXU-aligned row tile that fits the VMEM budget; prefers exact divisors."""
    if dhw < 128:
        return _round_up(dhw, 8)          # single tile covering the (padded) row dim

    def step_bytes(t):
        return (t * kp * 2 * 2            # bf16 patch block, double-buffered
                + t * coutp * 2 * 2       # bf16 y block, double-buffered
                + kp * coutp * 2 * 2      # bf16 weights, double-buffered
                + t * coutp * 4 * 2)      # in-kernel f32 accumulator / temporaries

    cands = [t for t in (1024, 512, 256, 128) if step_bytes(t) <= budget] or [128]
    cands = [t for t in cands if t <= _round_up(dhw, 128)] or [128]
    for t in cands:                        # prefer a divisor (no row padding / masking)
        if dhw % t == 0 and 2 * t >= cands[0]:
            return t
    return cands[0]                        # pad + mask the last tile


def _pick_pass2_tile(dhwp, tile1):
    # Pass 2 is purely HBM-bound: grow the tile (amortize per-step overhead) up to 1024 rows.
    tile2 = tile1
    for m in (8, 4, 2):
        if tile1 * m <= 1024 and dhwp % (tile1 * m) == 0:
            tile2 = tile1 * m
            break
    return tile2


# --------------------------- Pallas kernels ---------------------------------

def _make_conv_stats_kernel(tile, dhw, need_mask):
    def kernel(p_ref, w_ref, bias_ref, y_ref, sum_ref, sq_ref):
        t = pl.program_id(1)
        # conv3d as im2col matmul: bf16 x bf16 -> f32 accumulate on the MXU.
        y = jnp.dot(p_ref[0], w_ref[...], preferred_element_type=jnp.float32)
        y = y + bias_ref[...]                                  # (1, Coutp) broadcast
        y_ref[0] = y.astype(y_ref.dtype)                       # bf16 intermediate
        if need_mask:                                          # drop padded DHW rows
            rows = lax.broadcasted_iota(jnp.int32, (tile, 1), 0) + t * tile
            y = jnp.where(rows < dhw, y, 0.0)
        s_sum = jnp.sum(y, axis=0, keepdims=True)              # (1, Coutp) f32
        s_sq = jnp.sum(y * y, axis=0, keepdims=True)

        @pl.when(t == 0)
        def _init():
            sum_ref[0] = s_sum
            sq_ref[0] = s_sq

        @pl.when(t != 0)
        def _acc():
            sum_ref[0] += s_sum
            sq_ref[0] += s_sq

    return kernel


def _make_affine_silu_kernel(cout):
    def kernel(y_ref, a_ref, b_ref, out_ref):
        # fused (GroupNorm + gamma/beta + scale_shift) affine, then SiLU
        y = y_ref[0].astype(jnp.float32) * a_ref[0] + b_ref[0]
        z = y * jax.nn.sigmoid(y)
        # channel-major output: in-kernel transpose (XLU slack) + channel slice -> no
        # trailing slice / NDHWC->NCDHW passes in the wrapper.
        out_ref[0] = z.astype(out_ref.dtype).T[:cout, :]

    return kernel


def _make_conv_affine_silu_kernel(cout):
    def kernel(p_ref, w_ref, bias_ref, a_ref, b_ref, out_ref):
        # no-norm path: conv + bias + scale_shift + SiLU in one pass
        y = jnp.dot(p_ref[0], w_ref[...], preferred_element_type=jnp.float32)
        y = (y + bias_ref[...]) * a_ref[0] + b_ref[0]
        z = y * jax.nn.sigmoid(y)
        out_ref[0] = z.astype(out_ref.dtype).T[:cout, :]

    return kernel


# ------------------------------ wrapper --------------------------------------

def block3d_forward(x, conv_w, conv_b, gn_w, gn_b, scale_shift=None, *, groups=2):
    """x: (B, Cin, D, H, W). conv_w: (Cout, Cin, 3, 3, 3). Returns (B, Cout, D, H, W)."""
    B, Cin, D, H, W = x.shape
    Cout = conv_w.shape[0]
    use_norm = (Cin % 2 == 0)
    if use_norm:
        assert Cout % groups == 0, "GroupNorm requires Cout % groups == 0"

    DHW = D * H * W
    K = Cin * 27
    Kp = _round_up(K, 128)
    Coutp = _round_up(Cout, 128)

    f32 = jnp.float32
    gn_eps = 1e-5
    ws_eps = 1e-5 if x.dtype == jnp.float32 else 1e-3

    vmem_bytes = _vmem_limit_bytes()
    TILE = _pick_pass1_tile(DHW, Kp, Coutp, (vmem_bytes * 3) // 5)
    DHWp = _round_up(DHW, TILE)
    T = DHWp // TILE
    need_mask = DHWp != DHW
    TILE2 = _pick_pass2_tile(DHWp, TILE)
    T2 = DHWp // TILE2

    # --- weight standardization (per the module: (var + eps) ** (1/3)) ---
    w = conv_w.astype(f32)
    wmean = jnp.mean(w, axis=(1, 2, 3, 4), keepdims=True)
    wvar = jnp.var(w, axis=(1, 2, 3, 4), keepdims=True)        # unbiased=False
    nw = (w - wmean) * (wvar + ws_eps) ** (1.0 / 3.0)

    # (Cout, Cin, kd, kh, kw) -> (kd, kh, kw, Cin, Cout) -> (Kp, Coutp) bf16
    wmat = jnp.transpose(nw, (2, 3, 4, 1, 0)).reshape(K, Cout)
    wmat = jnp.pad(wmat, ((0, Kp - K), (0, Coutp - Cout))).astype(jnp.bfloat16)

    # --- im2col built entirely in bf16, directly in (B, DHW, 27*Cin) order ---
    x_cl = jnp.transpose(x.astype(jnp.bfloat16), (0, 2, 3, 4, 1))   # (B, D, H, W, Cin)
    xp = jnp.pad(x_cl, ((0, 0), (1, 1), (1, 1), (1, 1), (0, 0)))
    taps = [xp[:, kd:kd + D, kh:kh + H, kw:kw + W, :]
            for kd in range(3) for kh in range(3) for kw in range(3)]
    if Kp > K:                                                  # fold lane padding into concat
        taps.append(jnp.zeros((B, D, H, W, Kp - K), jnp.bfloat16))
    patches = jnp.concatenate(taps, axis=-1).reshape(B, DHW, Kp)
    if need_mask:                                               # pad rows; masked in-kernel
        patches = jnp.pad(patches, ((0, 0), (0, DHWp - DHW), (0, 0)))

    bias = jnp.pad(conv_b.astype(f32), (0, Coutp - Cout)).reshape(1, Coutp)

    # scale_shift -> per-(batch, channel) vectors
    if scale_shift is None:
        scale = jnp.zeros((B, Cout), f32)
        shift = jnp.zeros((B, Cout), f32)
    else:
        s_in, sh_in = scale_shift
        scale = s_in.reshape(B, Cout).astype(f32)
        shift = sh_in.reshape(B, Cout).astype(f32)

    patch_spec = pl.BlockSpec((1, TILE, Kp), lambda b, t: (b, t, 0))
    w_spec = pl.BlockSpec((Kp, Coutp), lambda b, t: (0, 0))
    bias_spec = pl.BlockSpec((1, Coutp), lambda b, t: (0, 0))
    y_spec = pl.BlockSpec((1, TILE, Coutp), lambda b, t: (b, t, 0))
    vec_spec = pl.BlockSpec((1, 1, Coutp), lambda b, t: (b, 0, 0))
    stat_spec = pl.BlockSpec((1, 1, Coutp), lambda b, t: (b, 0, 0))

    if use_norm:
        # ---- pass 1: conv (+bias), bf16 y tiles, per-channel sum / sumsq accumulators ----
        y, ch_sum, ch_sq = pl.pallas_call(
            _make_conv_stats_kernel(TILE, DHW, need_mask),
            out_shape=(jax.ShapeDtypeStruct((B, DHWp, Coutp), jnp.bfloat16),
                       jax.ShapeDtypeStruct((B, 1, Coutp), f32),
                       jax.ShapeDtypeStruct((B, 1, Coutp), f32)),
            grid_spec=pltpu.PrefetchScalarGridSpec(
                num_scalar_prefetch=0, grid=(B, T),
                in_specs=[patch_spec, w_spec, bias_spec],
                out_specs=(y_spec, stat_spec, stat_spec)),
            compiler_params=pltpu.CompilerParams(
                dimension_semantics=("parallel", "arbitrary"),
                vmem_limit_bytes=vmem_bytes),
        )(patches, wmat, bias)

        # ---- fold GroupNorm stats + gamma/beta + scale_shift into A*y + B ----
        cpg = Cout // groups
        n = float(DHW * cpg)
        ch_sum = ch_sum[:, 0, :Cout]
        ch_sq = ch_sq[:, 0, :Cout]
        gsum = ch_sum.reshape(B, groups, cpg).sum(axis=-1)
        gsq = ch_sq.reshape(B, groups, cpg).sum(axis=-1)
        gmean = gsum / n
        gvar = jnp.maximum(gsq / n - gmean * gmean, 0.0)        # guard cancellation
        ginv = lax.rsqrt(gvar + gn_eps)
        mean_c = jnp.repeat(gmean, cpg, axis=1)                 # (B, Cout)
        inv_c = jnp.repeat(ginv, cpg, axis=1)
        gamma = gn_w.astype(f32)[None, :] * inv_c
        a_eff = gamma * (scale + 1.0)
        b_eff = (gn_b.astype(f32)[None, :] - gamma * mean_c) * (scale + 1.0) + shift
        a_eff = jnp.pad(a_eff, ((0, 0), (0, Coutp - Cout))).reshape(B, 1, Coutp)
        b_eff = jnp.pad(b_eff, ((0, 0), (0, Coutp - Cout))).reshape(B, 1, Coutp)

        # ---- pass 2: fused affine + SiLU, channel-major output, large tiles ----
        y2_spec = pl.BlockSpec((1, TILE2, Coutp), lambda b, t: (b, t, 0))
        vec2_spec = pl.BlockSpec((1, 1, Coutp), lambda b, t: (b, 0, 0))
        out_spec = pl.BlockSpec((1, Cout, TILE2), lambda b, t: (b, 0, t))
        out = pl.pallas_call(
            _make_affine_silu_kernel(Cout),
            out_shape=jax.ShapeDtypeStruct((B, Cout, DHWp), x.dtype),
            grid_spec=pltpu.PrefetchScalarGridSpec(
                num_scalar_prefetch=0, grid=(B, T2),
                in_specs=[y2_spec, vec2_spec, vec2_spec],
                out_specs=out_spec),
            compiler_params=pltpu.CompilerParams(
                dimension_semantics=("parallel", "parallel"),
                vmem_limit_bytes=vmem_bytes),
        )(y, a_eff, b_eff)
    else:
        a_eff = jnp.pad(scale + 1.0, ((0, 0), (0, Coutp - Cout))).reshape(B, 1, Coutp)
        b_eff = jnp.pad(shift, ((0, 0), (0, Coutp - Cout))).reshape(B, 1, Coutp)
        out_spec = pl.BlockSpec((1, Cout, TILE), lambda b, t: (b, 0, t))
        out = pl.pallas_call(
            _make_conv_affine_silu_kernel(Cout),
            out_shape=jax.ShapeDtypeStruct((B, Cout, DHWp), x.dtype),
            grid_spec=pltpu.PrefetchScalarGridSpec(
                num_scalar_prefetch=0, grid=(B, T),
                in_specs=[patch_spec, w_spec, bias_spec, vec_spec, vec_spec],
                out_specs=out_spec),
            compiler_params=pltpu.CompilerParams(
                dimension_semantics=("parallel", "parallel"),
                vmem_limit_bytes=vmem_bytes),
        )(patches, wmat, bias, a_eff, b_eff)

    if need_mask:
        out = out[:, :, :DHW]
    return out.reshape(B, Cout, D, H, W)                        # NCDHW, reshape is free


# ---------------- pure-JAX reference (matches the PyTorch module) ----------------
def block3d_ref(x, conv_w, conv_b, gn_w, gn_b, scale_shift=None, *, groups=2):
    ws_eps = 1e-5 if x.dtype == jnp.float32 else 1e-3
    wmean = jnp.mean(conv_w, axis=(1, 2, 3, 4), keepdims=True)
    wvar = jnp.var(conv_w, axis=(1, 2, 3, 4), keepdims=True)
    nw = (conv_w - wmean) * (wvar + ws_eps) ** (1.0 / 3.0)
    y = lax.conv_general_dilated(
        x, nw, window_strides=(1, 1, 1), padding=[(1, 1)] * 3,
        dimension_numbers=("NCDHW", "OIDHW", "NCDHW"),
        precision=lax.Precision.HIGHEST)
    y = y + conv_b.reshape(1, -1, 1, 1, 1)
    if x.shape[1] % 2 == 0:
        B, C = y.shape[:2]
        yg = y.reshape(B, groups, C // groups, -1)
        m = yg.mean(axis=(2, 3), keepdims=True)
        v = yg.var(axis=(2, 3), keepdims=True)
        yg = (yg - m) / jnp.sqrt(v + 1e-5)
        y = yg.reshape(y.shape) * gn_w.reshape(1, -1, 1, 1, 1) + gn_b.reshape(1, -1, 1, 1, 1)
    if scale_shift is not None:
        s, sh = scale_shift
        y = y * (s + 1.0) + sh
    return y * jax.nn.sigmoid(y)


if __name__ == "__main__":
    key = jax.random.PRNGKey(0)
    (k_x, k_w, k_b, k_gw, k_gb, k_s, k_sh, k_x2, k_w2, k_b2) = jax.random.split(key, 10)

    # --- GroupNorm path (dim even), with scale_shift ---
    B, dim, dim_out = 2, 4, 8
    D = H = W = 8
    groups = 2

    x = jax.random.normal(k_x, (B, dim, D, H, W), jnp.float32)
    conv_w = 0.2 * jax.random.normal(k_w, (dim_out, dim, 3, 3, 3), jnp.float32)
    conv_b = 0.1 * jax.random.normal(k_b, (dim_out,), jnp.float32)
    gn_w = 1.0 + 0.1 * jax.random.normal(k_gw, (dim_out,), jnp.float32)
    gn_b = 0.1 * jax.random.normal(k_gb, (dim_out,), jnp.float32)
    scale = 0.1 * jax.random.normal(k_s, (B, dim_out, 1, 1, 1), jnp.float32)
    shift = 0.1 * jax.random.normal(k_sh, (B, dim_out, 1, 1, 1), jnp.float32)

    out = jax.block_until_ready(
        block3d_forward(x, conv_w, conv_b, gn_w, gn_b,
                        scale_shift=(scale, shift), groups=groups))
    ref = jax.block_until_ready(
        block3d_ref(x, conv_w, conv_b, gn_w, gn_b,
                    scale_shift=(scale, shift), groups=groups))
    assert out.shape == (B, dim_out, D, H, W)
    # bf16 MXU matmul + bf16 intermediate vs f32 HIGHEST-precision reference
    np.testing.assert_allclose(np.asarray(out), np.asarray(ref), rtol=6e-2, atol=6e-2)

    # --- GroupNorm path, scale_shift=None ---
    out2 = jax.block_until_ready(
        block3d_forward(x, conv_w, conv_b, gn_w, gn_b, scale_shift=None, groups=groups))
    ref2 = block3d_ref(x, conv_w, conv_b, gn_w, gn_b, scale_shift=None, groups=groups)
    np.testing.assert_allclose(np.asarray(out2), np.asarray(ref2), rtol=6e-2, atol=6e-2)

    # --- no-norm path (dim odd): fused single-pass kernel ---
    dim_odd = 3
    x3 = jax.random.normal(k_x2, (B, dim_odd, D, H, W), jnp.float32)
    conv_w3 = 0.2 * jax.random.normal(k_w2, (dim_out, dim_odd, 3, 3, 3), jnp.float32)
    conv_b3 = 0.1 * jax.random.normal(k_b2, (dim_out,), jnp.float32)
    out3 = jax.block_until_ready(
        block3d_forward(x3, conv_w3, conv_b3, gn_w, gn_b,
                        scale_shift=(scale, shift), groups=groups))
    ref3 = block3d_ref(x3, conv_w3, conv_b3, gn_w, gn_b,
                       scale_shift=(scale, shift), groups=groups)
    np.testing.assert_allclose(np.asarray(out3), np.asarray(ref3), rtol=6e-2, atol=6e-2)

    print("KERNEL_OK")
</pallas_src>

<mosaic_0001>
module attributes {stable_mosaic.version = 11 : i64} {
  func.func @kernel(%arg0: i32, %arg1: i32, %arg2: memref<1x512x128xbf16, #tpu.memory_space<vmem>>, %arg3: memref<128x128xbf16, #tpu.memory_space<vmem>>, %arg4: memref<1x128xf32, #tpu.memory_space<vmem>>, %arg5: memref<1x512x128xbf16, #tpu.memory_space<vmem>>, %arg6: memref<1x1x128xf32, #tpu.memory_space<vmem>>, %arg7: memref<1x1x128xf32, #tpu.memory_space<vmem>>) attributes {dimension_semantics = [#tpu.dimension_semantics<parallel>, #tpu.dimension_semantics<arbitrary>], iteration_bounds = array<i64: 2, 1>, scalar_prefetch = 0 : i64, scratch_operands = 0 : i64, tpu.core_type = #tpu.core_type<tc>, window_params = [{transform_indices = @transform_0, window_bounds = array<i64: 1, 512, 128>}, {pipeline_mode = #tpu.pipeline_mode<synchronous>, transform_indices = @transform_1, window_bounds = array<i64: 128, 128>}, {pipeline_mode = #tpu.pipeline_mode<synchronous>, transform_indices = @transform_2, window_bounds = array<i64: 1, 128>}, {transform_indices = @transform_3, window_bounds = array<i64: 1, 512, 128>}, {transform_indices = @transform_4, window_bounds = array<i64: 1, 1, 128>}, {transform_indices = @transform_5, window_bounds = array<i64: 1, 1, 128>}]} {
    %c0 = arith.constant 0 : index
    %c0_0 = arith.constant 0 : index
    %c0_1 = arith.constant 0 : index
    %0 = vector.load %arg2[%c0, %c0_0, %c0_1] : memref<1x512x128xbf16, #tpu.memory_space<vmem>>, vector<1x512x128xbf16>
    %1 = vector.shape_cast %0 : vector<1x512x128xbf16> to vector<512x128xbf16>
    %c0_2 = arith.constant 0 : index
    %c0_3 = arith.constant 0 : index
    %2 = vector.load %arg3[%c0_2, %c0_3] : memref<128x128xbf16, #tpu.memory_space<vmem>>, vector<128x128xbf16>
    %cst = arith.constant dense<0.000000e+00> : vector<512x128xf32>
    %3 = tpu.matmul %1, %2, %cst {dimension_numbers = #tpu.dot_dimension_numbers<[1], [0], [0], [1], [0, 0, 1, 1], [], []>} : vector<512x128xbf16>, vector<128x128xbf16>, vector<512x128xf32> -> vector<512x128xf32>
    %c0_4 = arith.constant 0 : index
    %c0_5 = arith.constant 0 : index
    %4 = vector.load %arg4[%c0_4, %c0_5] : memref<1x128xf32, #tpu.memory_space<vmem>>, vector<1x128xf32>
    %5 = vector.broadcast %4 : vector<1x128xf32> to vector<512x128xf32>
    %6 = arith.addf %3, %5 : vector<512x128xf32>
    %7 = arith.truncf %6 : vector<512x128xf32> to vector<512x128xbf16>
    %c0_6 = arith.constant 0 : index
    %c0_7 = arith.constant 0 : index
    %c0_8 = arith.constant 0 : index
    %8 = vector.load %arg5[%c0_6, %c0_7, %c0_8] : memref<1x512x128xbf16, #tpu.memory_space<vmem>>, vector<1x512x128xbf16>
    %9 = vector.shape_cast %8 : vector<1x512x128xbf16> to vector<512x128xbf16>
    %10 = vector.shape_cast %7 : vector<512x128xbf16> to vector<1x512x128xbf16>
    tpu.vector_store %arg5[%c0_6, %c0_7, %c0_8], %10 {strides = array<i32>} : memref<1x512x128xbf16, #tpu.memory_space<vmem>>, vector<1x512x128xbf16>,
    %cst_9 = arith.constant dense<0.000000e+00> : vector<128xf32>
    %11 = vector.multi_reduction <add>, %6, %cst_9 [0] : vector<512x128xf32> to vector<128xf32>
    %12 = vector.shape_cast %11 : vector<128xf32> to vector<1x128xf32>
    %13 = arith.mulf %6, %6 : vector<512x128xf32>
    %cst_10 = arith.constant dense<0.000000e+00> : vector<128xf32>
    %14 = vector.multi_reduction <add>, %13, %cst_10 [0] : vector<512x128xf32> to vector<128xf32>
    %15 = vector.shape_cast %14 : vector<128xf32> to vector<1x128xf32>
    %c0_i32 = arith.constant 0 : i32
    %16 = arith.cmpi eq, %arg1, %c0_i32 : i32
    %17 = arith.extui %16 : i1 to i32
    %c0_i32_11 = arith.constant 0 : i32
    %18 = arith.cmpi ne, %17, %c0_i32_11 : i32
    scf.if %18 {
      %c0_14 = arith.constant 0 : index
      %c0_15 = arith.constant 0 : index
      %c0_16 = arith.constant 0 : index
      %22 = vector.load %arg6[%c0_14, %c0_15, %c0_16] : memref<1x1x128xf32, #tpu.memory_space<vmem>>, vector<1x1x128xf32>
      %23 = vector.shape_cast %22 : vector<1x1x128xf32> to vector<1x128xf32>
      %24 = vector.shape_cast %12 : vector<1x128xf32> to vector<1x1x128xf32>
      tpu.vector_store %arg6[%c0_14, %c0_15, %c0_16], %24 {strides = array<i32>} : memref<1x1x128xf32, #tpu.memory_space<vmem>>, vector<1x1x128xf32>,
      %c0_17 = arith.constant 0 : index
      %c0_18 = arith.constant 0 : index
      %c0_19 = arith.constant 0 : index
      %25 = vector.load %arg7[%c0_17, %c0_18, %c0_19] : memref<1x1x128xf32, #tpu.memory_space<vmem>>, vector<1x1x128xf32>
      %26 = vector.shape_cast %25 : vector<1x1x128xf32> to vector<1x128xf32>
      %27 = vector.shape_cast %15 : vector<1x128xf32> to vector<1x1x128xf32>
      tpu.vector_store %arg7[%c0_17, %c0_18, %c0_19], %27 {strides = array<i32>} : memref<1x1x128xf32, #tpu.memory_space<vmem>>, vector<1x1x128xf32>,
    } else {
    }
    %c0_i32_12 = arith.constant 0 : i32
    %19 = arith.cmpi ne, %arg1, %c0_i32_12 : i32
    %20 = arith.extui %19 : i1 to i32
    %c0_i32_13 = arith.constant 0 : i32
    %21 = arith.cmpi ne, %20, %c0_i32_13 : i32
    scf.if %21 {
      %c0_14 = arith.constant 0 : index
      %c0_15 = arith.constant 0 : index
      %c0_16 = arith.constant 0 : index
      %22 = vector.load %arg6[%c0_14, %c0_15, %c0_16] : memref<1x1x128xf32, #tpu.memory_space<vmem>>, vector<1x1x128xf32>
      %23 = vector.shape_cast %22 : vector<1x1x128xf32> to vector<1x128xf32>
      %24 = arith.addf %23, %12 : vector<1x128xf32>
      %c0_17 = arith.constant 0 : index
      %c0_18 = arith.constant 0 : index
      %c0_19 = arith.constant 0 : index
      %25 = vector.load %arg6[%c0_17, %c0_18, %c0_19] : memref<1x1x128xf32, #tpu.memory_space<vmem>>, vector<1x1x128xf32>
      %26 = vector.shape_cast %25 : vector<1x1x128xf32> to vector<1x128xf32>
      %27 = vector.shape_cast %24 : vector<1x128xf32> to vector<1x1x128xf32>
      tpu.vector_store %arg6[%c0_17, %c0_18, %c0_19], %27 {strides = array<i32>} : memref<1x1x128xf32, #tpu.memory_space<vmem>>, vector<1x1x128xf32>,
      %c0_20 = arith.constant 0 : index
      %c0_21 = arith.constant 0 : index
      %c0_22 = arith.constant 0 : index
      %28 = vector.load %arg7[%c0_20, %c0_21, %c0_22] : memref<1x1x128xf32, #tpu.memory_space<vmem>>, vector<1x1x128xf32>
      %29 = vector.shape_cast %28 : vector<1x1x128xf32> to vector<1x128xf32>
      %30 = arith.addf %29, %15 : vector<1x128xf32>
      %c0_23 = arith.constant 0 : index
      %c0_24 = arith.constant 0 : index
      %c0_25 = arith.constant 0 : index
      %31 = vector.load %arg7[%c0_23, %c0_24, %c0_25] : memref<1x1x128xf32, #tpu.memory_space<vmem>>, vector<1x1x128xf32>
      %32 = vector.shape_cast %31 : vector<1x1x128xf32> to vector<1x128xf32>
      %33 = vector.shape_cast %30 : vector<1x128xf32> to vector<1x1x128xf32>
      tpu.vector_store %arg7[%c0_23, %c0_24, %c0_25], %33 {strides = array<i32>} : memref<1x1x128xf32, #tpu.memory_space<vmem>>, vector<1x1x128xf32>,
    } else {
    }
    return
  }
  func.func @transform_0(%arg0: i32, %arg1: i32) -> (i32, i32, i32) {
    %c0_i32 = arith.constant 0 : i32
    %c0_i32_0 = arith.constant 0 : i32
    return %arg0, %arg1, %c0_i32 : i32, i32, i32
  }
  func.func @transform_1(%arg0: i32, %arg1: i32) -> (i32, i32) {
    %c0_i32 = arith.constant 0 : i32
    %c0_i32_0 = arith.constant 0 : i32
    %c0_i32_1 = arith.constant 0 : i32
    return %c0_i32, %c0_i32_0 : i32, i32
  }
  func.func @transform_2(%arg0: i32, %arg1: i32) -> (i32, i32) {
    %c0_i32 = arith.constant 0 : i32
    %c0_i32_0 = arith.constant 0 : i32
    %c0_i32_1 = arith.constant 0 : i32
    return %c0_i32, %c0_i32_0 : i32, i32
  }
  func.func @transform_3(%arg0: i32, %arg1: i32) -> (i32, i32, i32) {
    %c0_i32 = arith.constant 0 : i32
    %c0_i32_0 = arith.constant 0 : i32
    return %arg0, %arg1, %c0_i32 : i32, i32, i32
  }
  func.func @transform_4(%arg0: i32, %arg1: i32) -> (i32, i32, i32) {
    %c0_i32 = arith.constant 0 : i32
    %c0_i32_0 = arith.constant 0 : i32
    %c0_i32_1 = arith.constant 0 : i32
    return %arg0, %c0_i32, %c0_i32_0 : i32, i32, i32
  }
  func.func @transform_5(%arg0: i32, %arg1: i32) -> (i32, i32, i32) {
    %c0_i32 = arith.constant 0 : i32
    %c0_i32_0 = arith.constant 0 : i32
    %c0_i32_1 = arith.constant 0 : i32
    return %arg0, %c0_i32, %c0_i32_0 : i32, i32, i32
  }
}

</mosaic_0001>

<bundles_post_ra>
// kernel: tpu_custom_call.1
= control target key start
LH: loop header
LB: loop body
LE: loop exit
PB: predicated region body
PF: predicated region fallthrough
CT: control target
= control target key end

     0   :  { %s2789_s0 = inlined_call_operand.hbm [shape: bf16[2,512,128], index: 0, kind: input, shape index: {}]   ;;  %s2790_s1 = inlined_call_operand.hbm [shape: bf16[128,128], index: 1, kind: input, shape index: {}]   ;;  %s2791_s2 = inlined_call_operand.vmem [shape: f32[1,128], index: 2, kind: input, shape index: {}]   ;;  %s2792_s3 = inlined_call_operand.hbm [shape: bf16[2,512,128], index: 3, kind: output, shape index: {0}]   ;;  %s2793_s4 = inlined_call_operand.hbm [shape: f32[2,1,128], index: 4, kind: output, shape index: {1}]   ;;  %s2794_s5 = inlined_call_operand.hbm [shape: f32[2,1,128], index: 5, kind: output, shape index: {2}]  }
   0x1   :  { %2801 = sst [smem:[#allocation17_spill]] %s2790_s1 }
   0x2   :  { %11 = vsyncpa [#allocation3], 0 }
   0x3   :  { %13 = vsyncpa [#allocation3 + $0x1], 0 }
   0x4   :  { %14 = vsyncpa [#allocation6], 0 }
   0x5   :  { %15 = vsyncpa [#allocation4], 0 }
   0x6   :  { %17 = vsyncpa [#allocation4 + $0x1], 0 }
   0x7   :  { %18 = vsyncpa [#allocation9], 0 }
   0x8   :  { %20 = vsyncpa [#allocation9 + $0x1], 0  ;;  %s2104_s18 = smov 0   ;;  %s2106_s19 = smov 0  }
   0x9   :  { %s2108_s20 = smov 0   ;;  %s2110_s21 = smov 0  }
   0xa   :  { %s2112_s22 = smov 0   ;;  %s2114_s23 = smov 0  }
   0xb LB: > { %2802 = sst [smem:[#allocation15_spill]] %s2067_s23  ;;  %s2135_s24 = sadd.s32 4294967295, %s2067_s23   ;;  %s2067_s23 = sphi %s2114_s23, %s26_s23   ;;  %s2063_s22 = sphi %s2112_s22, %s2819_s22   ;;  %s2059_s21 = sphi %s2110_s21, %s2818_s21   ;;  %s2055_s20 = sphi %s2108_s20, %s2817_s20   ;;  %s2051_s19 = sphi %s2106_s19, %s2816_s19   ;;  %s2047_s18 = sphi %s2104_s18, %s2815_s18  }
   0xc   : > { %s2795_s25 = sadd.s32 4294967294, %s2067_s23   ;;  %p60_p0 = scmp.ne.s32.totalorder %s2051_s19, %s2047_s18 }
   0xd   : > { %p61_p1 = scmp.eq.s32.totalorder %s2135_s24, 0  ;;  %p128_p2 = scmp.eq.s32.totalorder %s2135_s24, 1 }
   0xe   : > { %p134_p3 = scmp.eq.s32.totalorder %s2795_s25, 1  ;;  %p1341_p5 = scmp.ge.s32.totalorder %s2067_s23, 1 }
   0xf   : > { %p2146_p4 = por %p61_p1, %p60_p0  ;;  %p193_p7 = scmp.lt.s32.totalorder %s2067_s23, 3 }
  0x10   : > { %p2151_p6 = por %p134_p3, %p60_p0  ;;  %s2805_s1 = sld [smem:[#allocation17_spill]] }
  0x11   : > { %p2159_p8 = pnand %p1341_p5, %p193_p7  ;;  %s2069_s7 = smov [#allocation5]  }
  0x12   : > { %s206_s8 = sshll.u32 %s2069_s7, 4  ;;  %p1343_p11 = scmp.ge.s32.totalorder %s2067_s23, 2  ;;  %s207_s8 = int_to_ptr.vmem [resolvable:$true] %s206_s8 }
  0x13   : > { %p1785_p9 = pneg %p2159_p8  ;;  %s2796_s9 = smov 64  }
  0x14   : > { %s2797_s10 = smov 4   ;;  %s38_s11 = sadd.s32 1, %s2063_s22 }
  0x15   : > { %p1786_p10 = pnand %p1785_p9, %p61_p1  ;;  %p40_p12 = scmp.ge.s32.totalorder %s38_s11, 2 }
  0x16   : > { %s204_s30 = sshll.u32 %s2805_s1, 4  ;;  %s47_s12 = sadd.s32 1, %s2055_s20  ;;  %s205_s30 = int_to_ptr.hbm [resolvable:$true] %s204_s30 }
  0x17   : > { %1788 = dma.hbm_to_vmem [thread:$0]  (!%p1786_p10), %s205_s30, 1024, %s207_s8, [#allocation6], %s2796_s9, %s2796_s9, %s2797_s10  }
  0x18   : > { %p54_p13 = scmp.ne.s32.totalorder %s2055_s20, %s2051_s19  ;;  %p55_p0 = scmp.eq.s32.totalorder %s2067_s23, 0 }
  0x19   : > { %s2821_s11 = smov (%p40_p12, %s38_s11), 0  ;;  %p1804_p7 = scmp.lt.s32.totalorder %s2067_s23, 2 }
  0x1a   : > { %2807 = sst [smem:[#allocation16_spill]] %s2821_s11  ;;  %p2178_p3 = por %p55_p0, %p54_p13 }
  0x1b   : > { %p2184_p5 = por %p128_p2, %p54_p13  ;;  %s42_s15 = ssub.s32 %s2063_s22, %s2821_s11 }
  0x1c   : > { %p45_p9 = scmp.eq.s32.totalorder %s42_s15, 0  ;;  %s223_s16 = sand.u32 1, %s2055_s20  }
  0x1d   : > { %s1344_s17 = sshll.u32 %s223_s16, 8  ;;  %s1516_s29 = sshll.u32 %s2063_s22, 8 }
  0x1e   : > { %s2193_s28 = scalar_select %p45_p9, %s2055_s20, %s47_s12  }
  0x1f   : > { %s234_s8 = scalar_lea.hbm %s2789_s0, %s1516_s29  ;;  %s227_s25 = scalar_lea.vmem [#allocation2], %s1344_s17 }
  0x20   : > { %s237_s9 = sshll.u32 %s227_s25, 4  ;;  %s235_s10 = sshll.u32 %s234_s8, 4  ;;  %s238_s9 = int_to_ptr.vmem [resolvable:$true] %s237_s9  ;;  %s236_s10 = int_to_ptr.hbm [resolvable:$true] %s235_s10 }
  0x21   : > { %p1790_p2 = pnand %p1804_p7, %p2178_p3  ;;  %s224_s1 = scalar_lea.sflag [#allocation3], %s223_s16 }
  0x22   : > { %s2810_s11 = smov 4   ;;  %s2811_s23 = smov 64  }
  0x23   : > { %1792 = dma.hbm_to_vmem [thread:$0]  (!%p1790_p2), %s236_s10, 4096, %s238_s9, %s224_s1, %s2811_s23, %s2811_s23, %s2810_s11  }
  0x24   : > { %249 = sbr.rel (%p2159_p8) target bundleno = 449 (0x1c1), region = 32  ;;  %s2207_s12 = sand.u32 (!%p2159_p8), 1, %s2051_s19  }
  0x25   : > { %s1348_s25 = sshll.u32 (!%p2159_p8), %s2207_s12, 8  ;;  %s252_s15 = scalar_lea.sflag (!%p2159_p8), [#allocation3], %s2207_s12 }
  0x26   : > { %s2213_s13 = scalar_lea.vmem (!%p2159_p8), [#allocation2], %s1348_s25 }
  0x29   : > { %2030 = dma.done.wait (%p2146_p4), %s252_s15, 4096  }
  0x2a   : > { %2032 = vsyncadd (%p2146_p4), %s252_s15, 4294963200 }
  0x2b   : > { %2034 = dma.done.wait (%p61_p1), [#allocation6], 1024  }
  0x2c   : > { %2036 = vsyncadd (%p61_p1), [#allocation6], 4294966272  ;;  %v1556_v0 = vld [vmem:[#allocation5 + $0x38] sm:$0xff]  ;;  %v1555_v1 = vld [vmem:[#allocation5 + $0x30] sm:$0xff]  ;;  %s2270_s26 = scalar_lea.vmem [#allocation7], %s1348_s25  ;;  %s1557_s6 = sshll.u32 %s2059_s21, 8 }
  0x2d   : > { %622 = vmatpush.bf16.msra.mxu0 %v1556_v0  ;;  %1749 = vmatpush.bf16.msra.mxu1 %v1556_v0  ;;  %v1554_v2 = vld [vmem:[#allocation5 + $0x28] sm:$0xff]  ;;  %v1553_v3 = vld [vmem:[#allocation5 + $0x20] sm:$0xff]  ;;  %v1552_v4 = vld [vmem:[#allocation5 + $0x18] sm:$0xff]  ;;  %s1159_s11 = scalar_lea.hbm %s2792_s3, %s1557_s6  ;;  %s1160_s16 = sshll.u32 %s2270_s26, 4  ;;  %s2638_s16 = int_to_ptr.vmem [resolvable:$true] %s1160_s16 }
  0x2e   : > { %1750 = vmatpush.bf16.msra.mxu2 %v1556_v0  ;;  %1751 = vmatpush.bf16.msra.mxu3 %v1556_v0  ;;  %v1551_v5 = vld [vmem:[#allocation5 + $0x10] sm:$0xff]  ;;  %v1550_v6 = vld [vmem:[#allocation5 + $0x8] sm:$0xff]  ;;  %v1549_v7 = vld [vmem:[#allocation5] sm:$0xff]  ;;  %s1162_s17 = sshll.u32 %s1159_s11, 4  ;;  %s1138_s29 = scalar_lea.sflag [#allocation4], %s2207_s12  ;;  %s1163_s17 = int_to_ptr.hbm [resolvable:$true] %s1162_s17 }
  0x2f   : > { %v1517_v8 = vld [vmem:[%s2213_s13] sm:$0xff]  ;;  %v1518_v10 = vld [vmem:[%s2213_s13 + $0x8] sm:$0xff]  ;;  %v1519_v13 = vld [vmem:[%s2213_s13 + $0x10] sm:$0xff]  ;;  %s1935_s30 = sshra.s32 %s1163_s17, 4  ;;  %s1941_s15 = scalar_lea.hbm %s2792_s3, 512  ;;  %s1936_s30 = int_to_ptr.hbm [resolvable:$true] %s1935_s30 }
  0x30   : > { %v1525_v9 = vld [vmem:[%s2213_s13 + $0x40] sm:$0xff]  ;;  %v1526_v11 = vld [vmem:[%s2213_s13 + $0x48] sm:$0xff]  ;;  %v1527_v14 = vld [vmem:[%s2213_s13 + $0x50] sm:$0xff]  ;;  %s1937_s7 = scalar_lea.hbm %s1936_s30, 256  ;;  %p1942_p10 = scmp.lt.s32.totalorder %s1936_s30, %s2792_s3 }
  0x31   : > { %623 = vmatpush.bf16.msra.mxu0 %v1555_v1  ;;  %1752 = vmatpush.bf16.msra.mxu1 %v1555_v1  ;;  %v1533_v12 = vld [vmem:[%s2213_s13 + $0x80] sm:$0xff]  ;;  %v1534_v15 = vld [vmem:[%s2213_s13 + $0x88] sm:$0xff]  ;;  %v1520_v16 = vld [vmem:[%s2213_s13 + $0x18] sm:$0xff]  ;;  %p1938_p1 = scmp.ne.s32.totalorder %s1936_s30, %s1937_s7  ;;  %p1943_p12 = scmp.lt.s32.totalorder %s1941_s15, %s1937_s7 }
  0x32   : > { %1753 = vmatpush.bf16.msra.mxu2 %v1555_v1  ;;  %1754 = vmatpush.bf16.msra.mxu3 %v1555_v1  ;;  %v1528_v17 = vld [vmem:[%s2213_s13 + $0x58] sm:$0xff]  ;;  %v1535_v18 = vld [vmem:[%s2213_s13 + $0x90] sm:$0xff]  ;;  %v1541_v19 = vld [vmem:[%s2213_s13 + $0xc0] sm:$0xff] }
  0x33   : > { %v1521_v20 = vld [vmem:[%s2213_s13 + $0x20] sm:$0xff]  ;;  %v1536_v22 = vld [vmem:[%s2213_s13 + $0x98] sm:$0xff]  ;;  %v1542_v23 = vld [vmem:[%s2213_s13 + $0xc8] sm:$0xff]  ;;  %p1939_p4 = pnand %p1938_p1, %p2184_p5  ;;  %p1944_p13 = por %p1943_p12, %p1942_p10 }
  0x34   : > { %v1529_v21 = vld [vmem:[%s2213_s13 + $0x60] sm:$0xff]  ;;  %v1522_v24 = vld [vmem:[%s2213_s13 + $0x28] sm:$0xff]  ;;  %v1543_v27 = vld [vmem:[%s2213_s13 + $0xd0] sm:$0xff] }
  0x35   : > { %624 = vmatpush.bf16.msra.mxu0 %v1554_v2  ;;  %1755 = vmatpush.bf16.msra.mxu1 %v1554_v2  ;;  %v1530_v25 = vld [vmem:[%s2213_s13 + $0x68] sm:$0xff]  ;;  %v1537_v26 = vld [vmem:[%s2213_s13 + $0xa0] sm:$0xff]  ;;  %v1523_v28 = vld [vmem:[%s2213_s13 + $0x30] sm:$0xff]  ;;  %p1940_p8 = pneg %p1939_p4 }
  0x36   : > { %1756 = vmatpush.bf16.msra.mxu2 %v1554_v2  ;;  %1757 = vmatpush.bf16.msra.mxu3 %v1554_v2  ;;  %v1531_v29 = vld [vmem:[%s2213_s13 + $0x70] sm:$0xff]  ;;  %v1538_v30 = vld [vmem:[%s2213_s13 + $0xa8] sm:$0xff]  ;;  %v1544_v31 = vld [vmem:[%s2213_s13 + $0xd8] sm:$0xff] }
  0x37   : > { %v1524_v32 = vld [vmem:[%s2213_s13 + $0x38] sm:$0xff]  ;;  %v1539_v34 = vld [vmem:[%s2213_s13 + $0xb0] sm:$0xff]  ;;  %v1545_v35 = vld [vmem:[%s2213_s13 + $0xe0] sm:$0xff]  ;;  %p1945_p0 = pnand %p1944_p13, %p1940_p8 }
  0x38   : > { %v1532_v33 = vld [vmem:[%s2213_s13 + $0x78] sm:$0xff]  ;;  %v2254_v38 = vld [vmem:[%s2791_s2] ss:$0 sm:$0xff]  ;;  %v1546_v40 = vld [vmem:[%s2213_s13 + $0xe8] sm:$0xff] }
  0x39   : > { %625 = vmatpush.bf16.msra.mxu0 %v1553_v3  ;;  %1758 = vmatpush.bf16.msra.mxu1 %v1553_v3  ;;  %v1540_v39 = vld [vmem:[%s2213_s13 + $0xb8] sm:$0xff]  ;;  %v1547_v58 = vld [vmem:[%s2213_s13 + $0xf0] sm:$0xff] }
  0x3a   : > { %1759 = vmatpush.bf16.msra.mxu2 %v1553_v3  ;;  %1760 = vmatpush.bf16.msra.mxu3 %v1553_v3 }
  0x3d   : > { %626 = vmatpush.bf16.msra.mxu0 %v1552_v4  ;;  %1761 = vmatpush.bf16.msra.mxu1 %v1552_v4 }
  0x3e   : > { %1762 = vmatpush.bf16.msra.mxu2 %v1552_v4  ;;  %1763 = vmatpush.bf16.msra.mxu3 %v1552_v4 }
  0x41   : > { %627 = vmatpush.bf16.msra.mxu0 %v1551_v5  ;;  %1764 = vmatpush.bf16.msra.mxu1 %v1551_v5 }
  0x42   : > { %1765 = vmatpush.bf16.msra.mxu2 %v1551_v5  ;;  %1766 = vmatpush.bf16.msra.mxu3 %v1551_v5 }
  0x45   : > { %628 = vmatpush.bf16.msra.mxu0 %v1550_v6  ;;  %1767 = vmatpush.bf16.msra.mxu1 %v1550_v6 }
  0x46   : > { %1768 = vmatpush.bf16.msra.mxu2 %v1550_v6  ;;  %1769 = vmatpush.bf16.msra.mxu3 %v1550_v6 }
  0x49   : > { %629 = vmatpush.bf16.msra.mxu0 %v1549_v7  ;;  %1770 = vmatpush.bf16.msra.mxu1 %v1549_v7 }
  0x4a   : > { %1771 = vmatpush.bf16.msra.mxu2 %v1549_v7  ;;  %1772 = vmatpush.bf16.msra.mxu3 %v1549_v7 }
  0x4c   : > { %630 = vmatmul.bf16.vlgmr.msra.gmra.mxu0 %v1517_v8  ;;  %670 = vmatmul.bf16.vlgmr.msra.gmra.mxu1 %v1525_v9 }
  0x4d   : > { %710 = vmatmul.bf16.vlgmr.msra.gmra.mxu2 %v1533_v12  ;;  %750 = vmatmul.bf16.vlgmr.msra.gmra.mxu3 %v1541_v19  ;;  %v1548_v12 = vld [vmem:[%s2213_s13 + $0xf8] sm:$0xff] }
  0x5c   : > { %635 = vmatmul.bf16.gmra.mxu0 %v1518_v10  ;;  %675 = vmatmul.bf16.gmra.mxu1 %v1526_v11 }
  0x5d   : > { %715 = vmatmul.bf16.gmra.mxu2 %v1534_v15  ;;  %755 = vmatmul.bf16.gmra.mxu3 %v1542_v23 }
  0x6c   : > { %640 = vmatmul.bf16.gmra.mxu0 %v1519_v13  ;;  %680 = vmatmul.bf16.gmra.mxu1 %v1527_v14 }
  0x6d   : > { %720 = vmatmul.bf16.gmra.mxu2 %v1535_v18  ;;  %760 = vmatmul.bf16.gmra.mxu3 %v1543_v27 }
  0x7c   : > { %645 = vmatmul.bf16.gmra.mxu0 %v1520_v16  ;;  %685 = vmatmul.bf16.gmra.mxu1 %v1528_v17 }
  0x7d   : > { %725 = vmatmul.bf16.gmra.mxu2 %v1536_v22  ;;  %765 = vmatmul.bf16.gmra.mxu3 %v1544_v31 }
  0x8c   : > { %650 = vmatmul.bf16.gmra.mxu0 %v1521_v20  ;;  %690 = vmatmul.bf16.gmra.mxu1 %v1529_v21 }
  0x8d   : > { %730 = vmatmul.bf16.gmra.mxu2 %v1537_v26  ;;  %770 = vmatmul.bf16.gmra.mxu3 %v1545_v35 }
  0x9c   : > { %655 = vmatmul.bf16.gmra.mxu0 %v1522_v24  ;;  %695 = vmatmul.bf16.gmra.mxu1 %v1530_v25 }
  0x9d   : > { %735 = vmatmul.bf16.gmra.mxu2 %v1538_v30  ;;  %775 = vmatmul.bf16.gmra.mxu3 %v1546_v40 }
  0xac   : > { %660 = vmatmul.bf16.gmra.mxu0 %v1523_v28  ;;  %700 = vmatmul.bf16.gmra.mxu1 %v1531_v29 }
  0xad   : > { %740 = vmatmul.bf16.gmra.mxu2 %v1539_v34  ;;  %780 = vmatmul.bf16.gmra.mxu3 %v1547_v58 }
  0xbc   : > { %665 = vmatmul.bf16.gmra.mxu0 %v1524_v32  ;;  %705 = vmatmul.bf16.gmra.mxu1 %v1532_v33 }
  0xbd   : > { %745 = vmatmul.bf16.gmra.mxu2 %v1540_v39  ;;  %785 = vmatmul.bf16.gmra.mxu3 %v1548_v12 }
  0xc9   : > { %v631_v36 = vpop.f32.mrf.mxu0  ;;  %v671_v37 = vpop.f32.mrf.mxu1 }
  0xca   : > { %v632_v41 = vadd.f32 %v2254_v38, %v631_v36  ;;  %v2260_v42 = vadd.f32 %v2254_v38, %v671_v37 }
  0xcc   : > { %v988_v47 = vmul.f32 %v632_v41, %v632_v41 }
  0xd0   : > { %v711_v1 = vpop.f32.mrf.mxu2  ;;  %v751_v36 = vpop.f32.mrf.mxu3 }
  0xd1   : > { %v633_v43 = vpop.f32.mrf.mxu0  ;;  %v673_v44 = vpop.f32.mrf.mxu1  ;;  %v2292_v9 = vadd.f32 %v2254_v38, %v711_v1 }
  0xd2   : > { %v634_v45 = vadd.f32 %v2254_v38, %v633_v43  ;;  %v2264_v46 = vadd.f32 %v2254_v38, %v673_v44  ;;  %v2350_v44 = vadd.f32 %v2254_v38, %v751_v36 }
  0xd4   : > { %v1561_v48 = vpack.c.bf16 %v634_v45, %v632_v41  ;;  %v919_v49 = vadd.f32 %v634_v45, %v632_v41  ;;  %v989_v50 = vmul.f32 %v634_v45, %v634_v45  ;;  %v1601_v51 = vpack.c.bf16 %v2264_v46, %v2260_v42 }
  0xd6   : > { %1562 = vst [vmem:[%s2270_s26] sm:$0xff] %v1561_v48   ;;  %v1052_v52 = vadd.f32 %v989_v50, %v988_v47 }
  0xd7   : > { %1725 = vst [vmem:[%s2270_s26 + $0x40] sm:$0xff] %v1601_v51  }
  0xd8   : > { %v713_v10 = vpop.f32.mrf.mxu2  ;;  %v753_v47 = vpop.f32.mrf.mxu3 }
  0xd9   : > { %v636_v53 = vpop.f32.mrf.mxu0  ;;  %v676_v54 = vpop.f32.mrf.mxu1  ;;  %v2295_v11 = vadd.f32 %v2254_v38, %v713_v10 }
  0xda   : > { %v637_v55 = vadd.f32 %v2254_v38, %v636_v53  ;;  %v2277_v60 = vadd.f32 %v2254_v38, %v676_v54 }
  0xdb   : > { %v1641_v13 = vpack.c.bf16 %v2295_v11, %v2292_v9 }
  0xdc   : > { %v920_v56 = vadd.f32 %v919_v49, %v637_v55  ;;  %v990_v57 = vmul.f32 %v637_v55, %v637_v55  ;;  %v2356_v49 = vadd.f32 %v2254_v38, %v753_v47 }
  0xdd   : > { %1733 = vst [vmem:[%s2270_s26 + $0x80] sm:$0xff] %v1641_v13  }
  0xde   : > { %v1053_v59 = vadd.f32 %v1052_v52, %v990_v57  ;;  %v1681_v51 = vpack.c.bf16 %v2356_v49, %v2350_v44 }
  0xe0   : > { %v716_v20 = vpop.f32.mrf.mxu2  ;;  %1741 = vst [vmem:[%s2270_s26 + $0xc0] sm:$0xff] %v1681_v51  }
  0xe1   : > { %v638_v61 = vpop.f32.mrf.mxu0  ;;  %v678_v62 = vpop.f32.mrf.mxu1  ;;  %v2320_v25 = vadd.f32 %v2254_v38, %v716_v20 }
  0xe2   : > { %v639_v63 = vadd.f32 %v2254_v38, %v638_v61  ;;  %v2281_v0 = vadd.f32 %v2254_v38, %v678_v62 }
  0xe4   : > { %v1566_v2 = vpack.c.bf16 %v639_v63, %v637_v55  ;;  %v2283_v3 = vadd.f32 %v920_v56, %v639_v63  ;;  %v991_v4 = vmul.f32 %v639_v63, %v639_v63  ;;  %v1606_v5 = vpack.c.bf16 %v2281_v0, %v2277_v60 }
  0xe6   : > { %1718 = vst [vmem:[%s2270_s26 + $0x8] sm:$0xff] %v1566_v2   ;;  %v2288_v6 = vadd.f32 %v1053_v59, %v991_v4  ;;  %v756_v59 = vpop.f32.mrf.mxu3 }
  0xe7   : > { %1726 = vst [vmem:[%s2270_s26 + $0x48] sm:$0xff] %v1606_v5   ;;  %v2386_v4 = vadd.f32 %v2254_v38, %v756_v59 }
  0xe8   : > { %v718_v26 = vpop.f32.mrf.mxu2 }
  0xe9   : > { %v641_v7 = vpop.f32.mrf.mxu0  ;;  %v681_v8 = vpop.f32.mrf.mxu1  ;;  %v2323_v27 = vadd.f32 %v2254_v38, %v718_v26 }
  0xea   : > { %v2302_v14 = vadd.f32 %v2254_v38, %v681_v8  ;;  %v2305_v17 = vadd.f32 %v2254_v38, %v641_v7 }
  0xeb   : > { %v1646_v28 = vpack.c.bf16 %v2323_v27, %v2320_v25 }
  0xec   : > { %v922_v51 = vadd.f32 %v2283_v3, %v2305_v17 }
  0xed   : > { %1734 = vst [vmem:[%s2270_s26 + $0x88] sm:$0xff] %v1646_v28  }
  0xee   : > { %v758_v7 = vpop.f32.mrf.mxu3 }
  0xef   : > { %v2392_v10 = vadd.f32 %v2254_v38, %v758_v7 }
  0xf0   : > { %v721_v35 = vpop.f32.mrf.mxu2 }
  0xf1   : > { %v643_v15 = vpop.f32.mrf.mxu0  ;;  %v683_v16 = vpop.f32.mrf.mxu1  ;;  %v2347_v43 = vadd.f32 %v2254_v38, %v721_v35  ;;  %v1686_v13 = vpack.c.bf16 %v2392_v10, %v2386_v4 }
  0xf2   : > { %v2308_v18 = vadd.f32 %v2254_v38, %v643_v15  ;;  %v2311_v19 = vadd.f32 %v2254_v38, %v683_v16 }
  0xf3   : > { %1742 = vst [vmem:[%s2270_s26 + $0xc8] sm:$0xff] %v1686_v13  }
  0xf4   : > { %v1571_v21 = vpack.c.bf16 %v2308_v18, %v2305_v17  ;;  %v1611_v22 = vpack.c.bf16 %v2311_v19, %v2302_v14 }
  0xf6   : > { %1719 = vst [vmem:[%s2270_s26 + $0x10] sm:$0xff] %v1571_v21   ;;  %v761_v26 = vpop.f32.mrf.mxu3 }
  0xf7   : > { %1727 = vst [vmem:[%s2270_s26 + $0x50] sm:$0xff] %v1611_v22  }
  0xf8   : > { %v723_v45 = vpop.f32.mrf.mxu2 }
  0xf9   : > { %v646_v23 = vpop.f32.mrf.mxu0  ;;  %v686_v24 = vpop.f32.mrf.mxu1  ;;  %v2353_v48 = vadd.f32 %v2254_v38, %v723_v45  ;;  %v993_v45 = vmul.f32 %v2308_v18, %v2308_v18 }
  0xfa   : > { %v2329_v29 = vadd.f32 %v2254_v38, %v686_v24  ;;  %v2332_v32 = vadd.f32 %v2254_v38, %v646_v23 }
  0xfb   : > { %v1651_v50 = vpack.c.bf16 %v2353_v48, %v2347_v43 }
  0xfd   : > { %1735 = vst [vmem:[%s2270_s26 + $0x90] sm:$0xff] %v1651_v50  }
 0x100   : > { %v726_v58 = vpop.f32.mrf.mxu2 }
 0x101   : > { %v648_v30 = vpop.f32.mrf.mxu0  ;;  %v688_v31 = vpop.f32.mrf.mxu1  ;;  %v2383_v2 = vadd.f32 %v2254_v38, %v726_v58 }
 0x102   : > { %v2335_v33 = vadd.f32 %v2254_v38, %v648_v30  ;;  %v2338_v34 = vadd.f32 %v2254_v38, %v688_v31  ;;  %v992_v31 = vmul.f32 %v2305_v17, %v2305_v17 }
 0x104   : > { %v1576_v37 = vpack.c.bf16 %v2335_v33, %v2332_v32  ;;  %v1616_v39 = vpack.c.bf16 %v2338_v34, %v2329_v29 }
 0x106   : > { %1720 = vst [vmem:[%s2270_s26 + $0x18] sm:$0xff] %v1576_v37  }
 0x107   : > { %1728 = vst [vmem:[%s2270_s26 + $0x58] sm:$0xff] %v1616_v39   ;;  %v2421_v39 = vadd.f32 %v2254_v38, %v761_v26 }
 0x108   : > { %v728_v5 = vpop.f32.mrf.mxu2 }
 0x109   : > { %v651_v40 = vpop.f32.mrf.mxu0  ;;  %v691_v41 = vpop.f32.mrf.mxu1  ;;  %v2389_v8 = vadd.f32 %v2254_v38, %v728_v5 }
 0x10a   : > { %v2364_v52 = vadd.f32 %v2254_v38, %v691_v41  ;;  %v2368_v55 = vadd.f32 %v2254_v38, %v651_v40  ;;  %v763_v41 = vpop.f32.mrf.mxu3 }
 0x10b   : > { %v1656_v12 = vpack.c.bf16 %v2389_v8, %v2383_v2  ;;  %v2429_v50 = vadd.f32 %v2254_v38, %v763_v41 }
 0x10c   : > { %v996_v7 = vmul.f32 %v2368_v55, %v2368_v55 }
 0x10d   : > { %1736 = vst [vmem:[%s2270_s26 + $0x98] sm:$0xff] %v1656_v12   ;;  %v1691_v59 = vpack.c.bf16 %v2429_v50, %v2421_v39 }
 0x10f   : > { %1743 = vst [vmem:[%s2270_s26 + $0xd0] sm:$0xff] %v1691_v59  }
 0x110   : > { %v731_v24 = vpop.f32.mrf.mxu2 }
 0x111   : > { %v653_v53 = vpop.f32.mrf.mxu0  ;;  %v693_v54 = vpop.f32.mrf.mxu1  ;;  %v2418_v37 = vadd.f32 %v2254_v38, %v731_v24 }
 0x112   : > { %v2371_v56 = vadd.f32 %v2254_v38, %v653_v53  ;;  %v2374_v57 = vadd.f32 %v2254_v38, %v693_v54  ;;  %v1055_v53 = vadd.f32 %v2288_v6, %v992_v31  ;;  %v994_v54 = vmul.f32 %v2332_v32, %v2332_v32 }
 0x114   : > { %v1581_v61 = vpack.c.bf16 %v2371_v56, %v2368_v55  ;;  %v1621_v62 = vpack.c.bf16 %v2374_v57, %v2364_v52  ;;  %v997_v26 = vmul.f32 %v2371_v56, %v2371_v56 }
 0x116   : > { %1721 = vst [vmem:[%s2270_s26 + $0x20] sm:$0xff] %v1581_v61   ;;  %v923_v61 = vadd.f32 %v922_v51, %v2308_v18 }
 0x117   : > { %1729 = vst [vmem:[%s2270_s26 + $0x60] sm:$0xff] %v1621_v62   ;;  %v1056_v62 = vadd.f32 %v1055_v53, %v993_v45 }
 0x118   : > { %v733_v40 = vpop.f32.mrf.mxu2  ;;  %v924_v6 = vadd.f32 %v923_v61, %v2332_v32 }
 0x119   : > { %v656_v63 = vpop.f32.mrf.mxu0  ;;  %v696_v1 = vpop.f32.mrf.mxu1  ;;  %v2426_v47 = vadd.f32 %v2254_v38, %v733_v40  ;;  %v1057_v17 = vadd.f32 %v1056_v62, %v994_v54 }
 0x11a   : > { %v2400_v15 = vadd.f32 %v2254_v38, %v696_v1  ;;  %v657_v21 = vadd.f32 %v2254_v38, %v656_v63  ;;  %v995_v63 = vmul.f32 %v2335_v33, %v2335_v33  ;;  %v925_v24 = vadd.f32 %v924_v6, %v2335_v33 }
 0x11b   : > { %v1661_v58 = vpack.c.bf16 %v2426_v47, %v2418_v37 }
 0x11c   : > { %v1058_v32 = vadd.f32 %v1057_v17, %v995_v63  ;;  %v926_v31 = vadd.f32 %v925_v24, %v2368_v55 }
 0x11d   : > { %1737 = vst [vmem:[%s2270_s26 + $0xa0] sm:$0xff] %v1661_v58  }
 0x11e   : > { %v927_v40 = vadd.f32 %v926_v31, %v2371_v56 }
 0x120   : > { %v928_v53 = vadd.f32 %v927_v40, %v657_v21 }
 0x121   : > { %v658_v16 = vpop.f32.mrf.mxu0  ;;  %v698_v20 = vpop.f32.mrf.mxu1 }
 0x122   : > { %v2405_v22 = vadd.f32 %v2254_v38, %v658_v16  ;;  %v2408_v23 = vadd.f32 %v2254_v38, %v698_v20  ;;  %v736_v16 = vpop.f32.mrf.mxu2  ;;  %v766_v20 = vpop.f32.mrf.mxu3 }
 0x123   : > { %v2468_v58 = vadd.f32 %v2254_v38, %v736_v16  ;;  %v2471_v55 = vadd.f32 %v2254_v38, %v766_v20 }
 0x124   : > { %v1586_v28 = vpack.c.bf16 %v2405_v22, %v657_v21  ;;  %v1626_v30 = vpack.c.bf16 %v2408_v23, %v2400_v15  ;;  %v999_v33 = vmul.f32 %v2405_v22, %v2405_v22 }
 0x126   : > { %1722 = vst [vmem:[%s2270_s26 + $0x28] sm:$0xff] %v1586_v28  }
 0x127   : > { %1730 = vst [vmem:[%s2270_s26 + $0x68] sm:$0xff] %v1626_v30  }
 0x129   : > { %v661_v35 = vpop.f32.mrf.mxu0  ;;  %v701_v36 = vpop.f32.mrf.mxu1 }
 0x12a   : > { %v2445_v3 = vadd.f32 %v2254_v38, %v701_v36  ;;  %v662_v18 = vadd.f32 %v2254_v38, %v661_v35  ;;  %v1059_v35 = vadd.f32 %v1058_v32, %v996_v7  ;;  %v998_v36 = vmul.f32 %v657_v21, %v657_v21  ;;  %v738_v59 = vpop.f32.mrf.mxu2  ;;  %v768_v61 = vpop.f32.mrf.mxu3 }
 0x12b   : > { %v2475_v63 = vadd.f32 %v2254_v38, %v738_v59  ;;  %v2478_v6 = vadd.f32 %v2254_v38, %v768_v61  ;;  %v929_v21 = vadd.f32 %v928_v53, %v2405_v22  ;;  %v1004_v53 = vmul.f32 %v2260_v42, %v2260_v42 }
 0x12c   : > { %v1060_v41 = vadd.f32 %v1059_v35, %v997_v26  ;;  %v1000_v62 = vmul.f32 %v662_v18, %v662_v18  ;;  %v1005_v61 = vmul.f32 %v2264_v46, %v2264_v46 }
 0x12d   : > { %v1696_v7 = vpack.c.bf16 %v2478_v6, %v2471_v55  ;;  %v930_v16 = vadd.f32 %v929_v21, %v662_v18 }
 0x12e   : > { %v1061_v54 = vadd.f32 %v1060_v41, %v998_v36 }
 0x12f   : > { %1744 = vst [vmem:[%s2270_s26 + $0xd8] sm:$0xff] %v1696_v7  }
 0x130   : > { %v1062_v17 = vadd.f32 %v1061_v54, %v999_v33 }
 0x131   : > { %v663_v1 = vpop.f32.mrf.mxu0  ;;  %v703_v5 = vpop.f32.mrf.mxu1 }
 0x132   : > { %v664_v12 = vadd.f32 %v2254_v38, %v663_v1  ;;  %v2454_v13 = vadd.f32 %v2254_v38, %v703_v5  ;;  %v1666_v5 = vpack.c.bf16 %v2475_v63, %v2468_v58  ;;  %v1063_v20 = vadd.f32 %v1062_v17, %v1000_v62  ;;  %v771_v40 = vpop.f32.mrf.mxu3 }
 0x134   : > { %v1591_v28 = vpack.c.bf16 %v664_v12, %v662_v18  ;;  %v1631_v30 = vpack.c.bf16 %v2454_v13, %v2445_v3  ;;  %v1001_v1 = vmul.f32 %v664_v12, %v664_v12  ;;  %1738 = vst [vmem:[%s2270_s26 + $0xa8] sm:$0xff] %v1666_v5   ;;  %v931_v32 = vadd.f32 %v930_v16, %v664_v12  ;;  %v741_v18 = vpop.f32.mrf.mxu2 }
 0x135   : > { %v2508_v5 = vadd.f32 %v2254_v38, %v741_v18  ;;  %v1009_v18 = vmul.f32 %v2311_v19, %v2311_v19 }
 0x136   : > { %1723 = vst [vmem:[%s2270_s26 + $0x30] sm:$0xff] %v1591_v28   ;;  %v1064_v28 = vadd.f32 %v1063_v20, %v1001_v1 }
 0x137   : > { %1731 = vst [vmem:[%s2270_s26 + $0x70] sm:$0xff] %v1631_v30  }
 0x139   : > { %v666_v45 = vpop.f32.mrf.mxu0  ;;  %v706_v51 = vpop.f32.mrf.mxu1 }
 0x13a   : > { %v667_v56 = vadd.f32 %v2254_v38, %v666_v45  ;;  %v2487_v26 = vadd.f32 %v2254_v38, %v706_v51  ;;  %v773_v16 = vpop.f32.mrf.mxu3 }
 0x13c   : > { %v1002_v24 = vmul.f32 %v667_v56, %v667_v56  ;;  %v932_v31 = vadd.f32 %v931_v32, %v667_v56  ;;  %v743_v7 = vpop.f32.mrf.mxu2 }
 0x13d   : > { %v2514_v20 = vadd.f32 %v2254_v38, %v743_v7 }
 0x13e   : > { %v1065_v41 = vadd.f32 %v1064_v28, %v1002_v24 }
 0x13f   : > { %v1671_v28 = vpack.c.bf16 %v2514_v20, %v2508_v5 }
 0x141   : > { %v668_v22 = vpop.f32.mrf.mxu0  ;;  %v708_v30 = vpop.f32.mrf.mxu1  ;;  %1739 = vst [vmem:[%s2270_s26 + $0xb0] sm:$0xff] %v1671_v28  }
 0x142   : > { %v669_v35 = vadd.f32 %v2254_v38, %v668_v22  ;;  %v2492_v36 = vadd.f32 %v2254_v38, %v708_v30  ;;  %v1008_v30 = vmul.f32 %v2302_v14, %v2302_v14 }
 0x144   : > { %v1596_v33 = vpack.c.bf16 %v669_v35, %v667_v56  ;;  %v933_v12 = vadd.f32 %v932_v31, %v669_v35  ;;  %v1003_v45 = vmul.f32 %v669_v35, %v669_v35  ;;  %v1636_v51 = vpack.c.bf16 %v2492_v36, %v2487_v26 }
 0x145   : > { %v1006_v56 = vmul.f32 %v2277_v60, %v2277_v60 }
 0x146   : > { %1724 = vst [vmem:[%s2270_s26 + $0x38] sm:$0xff] %v1596_v33   ;;  %v934_v54 = vadd.f32 %v933_v12, %v2260_v42  ;;  %v1066_v59 = vadd.f32 %v1065_v41, %v1003_v45  ;;  %v2511_v42 = vadd.f32 %v2254_v38, %v771_v40  ;;  %v1010_v41 = vmul.f32 %v2329_v29, %v2329_v29  ;;  %v746_v45 = vpop.f32.mrf.mxu2 }
 0x147   : > { %1732 = vst [vmem:[%s2270_s26 + $0x78] sm:$0xff] %v1636_v51   ;;  %v776_v51 = vpop.f32.mrf.mxu3 }
 0x148   : > { %v935_v62 = vadd.f32 %v934_v54, %v2264_v46  ;;  %v1067_v21 = vadd.f32 %v1066_v59, %v1004_v53  ;;  %v2517_v46 = vadd.f32 %v2254_v38, %v773_v16  ;;  %v1012_v59 = vmul.f32 %v2364_v52, %v2364_v52 }
 0x149   : > { %v2553_v7 = vadd.f32 %v2254_v38, %v776_v51 }
 0x14a   : > { %v936_v17 = vadd.f32 %v935_v62, %v2277_v60  ;;  %v1068_v1 = vadd.f32 %v1067_v21, %v1005_v61  ;;  %v1007_v60 = vmul.f32 %v2281_v0, %v2281_v0  ;;  %v1701_v22 = vpack.c.bf16 %v2517_v46, %v2511_v42 }
 0x14b   : > { %v1013_v62 = vmul.f32 %v2374_v57, %v2374_v57 }
 0x14c   : > { %v937_v24 = vadd.f32 %v936_v17, %v2281_v0  ;;  %v1069_v32 = vadd.f32 %v1068_v1, %v1006_v56  ;;  %1745 = vst [vmem:[%s2270_s26 + $0xe0] sm:$0xff] %v1701_v22   ;;  %v1014_v56 = vmul.f32 %v2400_v15, %v2400_v15  ;;  %v2550_v1 = vadd.f32 %v2254_v38, %v746_v45 }
 0x14e   : > { %v938_v31 = vadd.f32 %v937_v24, %v2302_v14  ;;  %v1070_v35 = vadd.f32 %v1069_v32, %v1007_v60  ;;  %v1011_v14 = vmul.f32 %v2338_v34, %v2338_v34 }
 0x14f   : > { %v778_v16 = vpop.f32.mrf.mxu3 }
 0x150   : > { %v939_v40 = vadd.f32 %v938_v31, %v2311_v19  ;;  %v1071_v0 = vadd.f32 %v1070_v35, %v1008_v30  ;;  %v1016_v31 = vmul.f32 %v2445_v3, %v2445_v3 }
 0x152   : > { %v1072_v33 = vadd.f32 %v1071_v0, %v1009_v18  ;;  %v940_v12 = vadd.f32 %v939_v40, %v2329_v29 }
 0x154   : > { %v941_v53 = vadd.f32 %v940_v12, %v2338_v34  ;;  %v1073_v54 = vadd.f32 %v1072_v33, %v1010_v41  ;;  %v1018_v33 = vmul.f32 %v2487_v26, %v2487_v26 }
 0x156   : > { %v942_v19 = vadd.f32 %v941_v53, %v2364_v52  ;;  %v1074_v61 = vadd.f32 %v1073_v54, %v1011_v14  ;;  %v748_v52 = vpop.f32.mrf.mxu2  ;;  %v1020_v14 = vmul.f32 %v2292_v9, %v2292_v9  ;;  %v1021_v54 = vmul.f32 %v2295_v11, %v2295_v11 }
 0x157   : > { %v2556_v60 = vadd.f32 %v2254_v38, %v748_v52  ;;  %v781_v12 = vpop.f32.mrf.mxu3 }
 0x158   : > { %v943_v21 = vadd.f32 %v942_v19, %v2374_v57  ;;  %v1075_v29 = vadd.f32 %v1074_v61, %v1012_v59  ;;  %v2559_v57 = vadd.f32 %v2254_v38, %v778_v16  ;;  %v1022_v19 = vmul.f32 %v2320_v25, %v2320_v25 }
 0x159   : > { %v1676_v28 = vpack.c.bf16 %v2556_v60, %v2550_v1  ;;  %v1025_v16 = vmul.f32 %v2353_v48, %v2353_v48 }
 0x15a   : > { %v944_v17 = vadd.f32 %v943_v21, %v2400_v15  ;;  %v1076_v34 = vadd.f32 %v1075_v29, %v1013_v62  ;;  %v1015_v15 = vmul.f32 %v2408_v23, %v2408_v23  ;;  %v1706_v22 = vpack.c.bf16 %v2559_v57, %v2553_v7 }
 0x15b   : > { %1740 = vst [vmem:[%s2270_s26 + $0xb8] sm:$0xff] %v1676_v28   ;;  %v1023_v29 = vmul.f32 %v2323_v27, %v2323_v27 }
 0x15c   : > { %v945_v24 = vadd.f32 %v944_v17, %v2408_v23  ;;  %v1077_v32 = vadd.f32 %v1076_v34, %v1014_v56  ;;  %v1017_v23 = vmul.f32 %v2454_v13, %v2454_v13  ;;  %1746 = vst [vmem:[%s2270_s26 + $0xe8] sm:$0xff] %v1706_v22  }
 0x15e   : > { %v946_v30 = vadd.f32 %v945_v24, %v2445_v3  ;;  %v1078_v35 = vadd.f32 %v1077_v32, %v1015_v15  ;;  %v1019_v3 = vmul.f32 %v2492_v36, %v2492_v36 }
 0x15f   : > { %v783_v21 = vpop.f32.mrf.mxu3 }
 0x160   : > { %v1079_v18 = vadd.f32 %v1078_v35, %v1016_v31  ;;  %v947_v40 = vadd.f32 %v946_v30, %v2454_v13  ;;  %v1028_v35 = vmul.f32 %v2418_v37, %v2418_v37 }
 0x162   : > { %v1080_v0 = vadd.f32 %v1079_v18, %v1017_v23  ;;  %v948_v41 = vadd.f32 %v947_v40, %v2487_v26 }
 0x164   : > { %v1081_v45 = vadd.f32 %v1080_v0, %v1018_v33  ;;  %v949_v51 = vadd.f32 %v948_v41, %v2492_v36  ;;  %v2592_v36 = vadd.f32 %v2254_v38, %v781_v12 }
 0x166   : > { %v950_v53 = vadd.f32 %v949_v51, %v2292_v9  ;;  %v1082_v13 = vadd.f32 %v1081_v45, %v1019_v3  ;;  %v2595_v9 = vadd.f32 %v2254_v38, %v783_v21  ;;  %v1031_v45 = vmul.f32 %v2475_v63, %v2475_v63 }
 0x167   : > { %v786_v22 = vpop.f32.mrf.mxu3 }
 0x168   : > { %v951_v59 = vadd.f32 %v950_v53, %v2295_v11  ;;  %v1083_v26 = vadd.f32 %v1082_v13, %v1020_v14  ;;  %v1711_v17 = vpack.c.bf16 %v2595_v9, %v2592_v36  ;;  %v2630_v41 = vadd.f32 %v2254_v38, %v786_v22 }
 0x16a   : > { %v952_v61 = vadd.f32 %v951_v59, %v2320_v25  ;;  %v1084_v62 = vadd.f32 %v1083_v26, %v1021_v54  ;;  %v1024_v25 = vmul.f32 %v2347_v43, %v2347_v43  ;;  %1747 = vst [vmem:[%s2270_s26 + $0xf0] sm:$0xff] %v1711_v17  }
 0x16c   : > { %v953_v11 = vadd.f32 %v952_v61, %v2323_v27  ;;  %v1085_v56 = vadd.f32 %v1084_v62, %v1022_v19  ;;  %v1026_v27 = vmul.f32 %v2383_v2, %v2383_v2 }
 0x16e   : > { %v954_v34 = vadd.f32 %v953_v11, %v2347_v43  ;;  %v1086_v52 = vadd.f32 %v1085_v56, %v1023_v29  ;;  %v1027_v43 = vmul.f32 %v2389_v8, %v2389_v8 }
 0x16f   : > { %v788_v33 = vpop.f32.mrf.mxu3 }
 0x170   : > { %v1087_v15 = vadd.f32 %v1086_v52, %v1024_v25  ;;  %v955_v24 = vadd.f32 %v954_v34, %v2353_v48  ;;  %v2633_v12 = vadd.f32 %v2254_v38, %v788_v33  ;;  %v1032_v38 = vmul.f32 %v2508_v5, %v2508_v5 }
 0x172   : > { %v956_v32 = vadd.f32 %v955_v24, %v2383_v2  ;;  %v1088_v28 = vadd.f32 %v1087_v15, %v1025_v16  ;;  %v1029_v2 = vmul.f32 %v2426_v47, %v2426_v47 }
 0x174   : > { %v957_v30 = vadd.f32 %v956_v32, %v2389_v8  ;;  %v1089_v31 = vadd.f32 %v1088_v28, %v1026_v27  ;;  %v1030_v8 = vmul.f32 %v2468_v58, %v2468_v58 }
 0x176   : > { %v958_v48 = vadd.f32 %v957_v30, %v2418_v37  ;;  %v1090_v18 = vadd.f32 %v1089_v31, %v1027_v43 }
 0x178   : > { %v959_v40 = vadd.f32 %v958_v48, %v2426_v47  ;;  %v1091_v23 = vadd.f32 %v1090_v18, %v1028_v35 }
 0x17a   : > { %v960_v0 = vadd.f32 %v959_v40, %v2468_v58  ;;  %v1092_v37 = vadd.f32 %v1091_v23, %v1029_v2  ;;  %v1716_v58 = vpack.c.bf16 %v2633_v12, %v2630_v41 }
 0x17c   : > { %v961_v47 = vadd.f32 %v960_v0, %v2475_v63  ;;  %v1093_v51 = vadd.f32 %v1092_v37, %v1030_v8  ;;  %1748 = vst [vmem:[%s2270_s26 + $0xf8] sm:$0xff] %v1716_v58   ;;  %v1033_v63 = vmul.f32 %v2514_v20, %v2514_v20 }
 0x17e   : > { %v1094_v3 = vadd.f32 %v1093_v51, %v1031_v45  ;;  %v962_v14 = vadd.f32 %v961_v47, %v2508_v5 }
 0x180   : > { %v1095_v53 = vadd.f32 %v1094_v3, %v1032_v38  ;;  %v963_v13 = vadd.f32 %v962_v14, %v2514_v20 }
 0x181   : > { %1948 = shalt.err (!%p1945_p0)
}
 0x182   : > { %s2072_s23 = smov 64   ;;  %s2073_s26 = smov 4   ;;  %v1096_v5 = vadd.f32 %v1095_v53, %v1033_v63  ;;  %v964_v20 = vadd.f32 %v963_v13, %v2550_v1  ;;  %v1034_v54 = vmul.f32 %v2550_v1, %v2550_v1  ;;  %v1035_v19 = vmul.f32 %v2556_v60, %v2556_v60 }
 0x183   : > { %1779 = dma.vmem_to_hbm [thread:$0]  (%p2184_p5), %s2638_s16, 4096, %s1163_s17, %s1138_s29, %s2072_s23, %s2072_s23, %s2073_s26   ;;  %v1036_v61 = vmul.f32 %v2350_v44, %v2350_v44  ;;  %v1037_v29 = vmul.f32 %v2356_v49, %v2356_v49  ;;  %v1038_v1 = vmul.f32 %v2386_v4, %v2386_v4  ;;  %v1047_v40 = vmul.f32 %v2559_v57, %v2559_v57 }
 0x184   : > { %v1097_v59 = vadd.f32 %v1096_v5, %v1034_v54  ;;  %v965_v26 = vadd.f32 %v964_v20, %v2556_v60  ;;  %v1039_v60 = vmul.f32 %v2392_v10, %v2392_v10  ;;  %v1048_v0 = vmul.f32 %v2592_v36, %v2592_v36  ;;  %s1174_s10 = scalar_lea.hbm %s2793_s4, %s2059_s21  ;;  %s1142_s11 = sand.u32 1, %s2135_s24  }
 0x185   : > { %s1187_s29 = scalar_lea.hbm %s2794_s5, %s2059_s21  ;;  %s289_s30 = scalar_lea.vmem [#allocation8], %s2207_s12 }
 0x186   : > { %v966_v62 = vadd.f32 %v965_v26, %v2350_v44  ;;  %v1098_v21 = vadd.f32 %v1097_v59, %v1035_v19  ;;  %v1040_v44 = vmul.f32 %v2421_v39, %v2421_v39  ;;  %s2725_s7 = sshll.u32 %s289_s30, 4  ;;  %s2727_s8 = sshll.u32 %s1174_s10, 4  ;;  %s1177_s7 = int_to_ptr.vmem [resolvable:$true] %s2725_s7  ;;  %s1179_s8 = int_to_ptr.hbm [resolvable:$true] %s2727_s8 }
 0x187   : > { %s295_s25 = scalar_lea.vmem [#allocation10], %s2207_s12  ;;  %s2732_s24 = sshll.u32 %s1187_s29, 4  ;;  %s1192_s24 = int_to_ptr.hbm [resolvable:$true] %s2732_s24 }
 0x188   : > { %v967_v11 = vadd.f32 %v966_v62, %v2356_v49  ;;  %v1099_v56 = vadd.f32 %v1098_v21, %v1036_v61  ;;  %v1041_v49 = vmul.f32 %v2429_v50, %v2429_v50  ;;  %s2730_s15 = sshll.u32 %s295_s25, 4  ;;  %s1143_s21 = scalar_lea.sflag [#allocation9], %s1142_s11  ;;  %s1190_s15 = int_to_ptr.vmem [resolvable:$true] %s2730_s15 }
 0x189   : > { %s1963_s13 = sshra.s32 %s1179_s8, 4  ;;  %s1969_s26 = scalar_lea.hbm %s2793_s4, 2  ;;  %s1964_s13 = int_to_ptr.hbm [resolvable:$true] %s1963_s13 }
 0x18a   : > { %v968_v17 = vadd.f32 %v967_v11, %v2386_v4  ;;  %v1100_v25 = vadd.f32 %v1099_v56, %v1037_v29  ;;  %v1042_v4 = vmul.f32 %v2471_v55, %v2471_v55  ;;  %s1965_s1 = scalar_lea.hbm %s1964_s13, 1  ;;  %p1970_p2 = scmp.lt.s32.totalorder %s1964_s13, %s2793_s4 }
 0x18b   : > { %p1966_p3 = scmp.ne.s32.totalorder %s1964_s13, %s1965_s1  ;;  %p1971_p1 = scmp.lt.s32.totalorder %s1969_s26, %s1965_s1 }
 0x18c   : > { %v969_v34 = vadd.f32 %v968_v17, %v2392_v10  ;;  %v1101_v52 = vadd.f32 %v1100_v25, %v1038_v1  ;;  %v1043_v10 = vmul.f32 %v2478_v6, %v2478_v6 }
 0x18d   : > { %p1967_p7 = pnand %p1966_p3, %p2184_p5  ;;  %p1972_p4 = por %p1971_p1, %p1970_p2 }
 0x18e   : > { %v970_v16 = vadd.f32 %v969_v34, %v2421_v39  ;;  %v1102_v15 = vadd.f32 %v1101_v52, %v1039_v60  ;;  %v1044_v39 = vmul.f32 %v2511_v42, %v2511_v42 }
 0x18f   : > { %p1968_p9 = pneg %p1967_p7 }
 0x190   : > { %v1103_v24 = vadd.f32 %v1102_v15, %v1040_v44  ;;  %v971_v27 = vadd.f32 %v970_v16, %v2429_v50  ;;  %v1045_v50 = vmul.f32 %v2517_v46, %v2517_v46 }
 0x191   : > { %p1973_p8 = pnand %p1972_p4, %p1968_p9 }
 0x192   : > { %v972_v32 = vadd.f32 %v971_v27, %v2471_v55  ;;  %v1104_v28 = vadd.f32 %v1103_v24, %v1041_v49  ;;  %v1046_v55 = vmul.f32 %v2553_v7, %v2553_v7 }
 0x194   : > { %v973_v22 = vadd.f32 %v972_v32, %v2478_v6  ;;  %v1105_v43 = vadd.f32 %v1104_v28, %v1042_v4 }
 0x196   : > { %v974_v30 = vadd.f32 %v973_v22, %v2511_v42  ;;  %v1106_v31 = vadd.f32 %v1105_v43, %v1043_v10 }
 0x198   : > { %v975_v35 = vadd.f32 %v974_v30, %v2517_v46  ;;  %v1107_v48 = vadd.f32 %v1106_v31, %v1044_v39 }
 0x19a   : > { %v976_v18 = vadd.f32 %v975_v35, %v2553_v7  ;;  %v1108_v2 = vadd.f32 %v1107_v48, %v1045_v50  ;;  %v1049_v7 = vmul.f32 %v2595_v9, %v2595_v9 }
 0x19c   : > { %v977_v6 = vadd.f32 %v976_v18, %v2559_v57  ;;  %v1109_v23 = vadd.f32 %v1108_v2, %v1046_v55  ;;  %v1050_v57 = vmul.f32 %v2630_v41, %v2630_v41 }
 0x19e   : > { %v1110_v42 = vadd.f32 %v1109_v23, %v1047_v40  ;;  %v978_v8 = vadd.f32 %v977_v6, %v2592_v36  ;;  %v1051_v36 = vmul.f32 %v2633_v12, %v2633_v12 }
 0x1a0   : > { %v1111_v46 = vadd.f32 %v1110_v42, %v1048_v0  ;;  %v979_v37 = vadd.f32 %v978_v8, %v2595_v9 }
 0x1a2   : > { %v1112_v33 = vadd.f32 %v1111_v46, %v1049_v7  ;;  %v980_v47 = vadd.f32 %v979_v37, %v2630_v41 }
 0x1a4   : > { %v1113_v45 = vadd.f32 %v1112_v33, %v1050_v57  ;;  %v981_v51 = vadd.f32 %v980_v47, %v2633_v12 }
 0x1a6   : > { %v982_v58 = vrot.slane %v981_v51, 4  ;;  %v1114_v3 = vadd.f32 %v1113_v45, %v1051_v36 }
 0x1a8   : > { %v983_v14 = vadd.f32 %v982_v58, %v981_v51  ;;  %v1115_v38 = vrot.slane %v1114_v3, 4 }
 0x1aa   : > { %v984_v9 = vrot.slane %v983_v14, 2  ;;  %v1116_v53 = vadd.f32 %v1115_v38, %v1114_v3 }
 0x1ac   : > { %v985_v13 = vadd.f32 %v984_v9, %v983_v14  ;;  %v1117_v41 = vrot.slane %v1116_v53, 2 }
 0x1ae   : > { %v986_v12 = vrot.slane %v985_v13, 1  ;;  %v1118_v63 = vadd.f32 %v1117_v41, %v1116_v53 }
 0x1b0   : > { %v1119_v5 = vrot.slane %v1118_v63, 1  ;;  %v987_v20 = vadd.f32 %v986_v12, %v985_v13 }
 0x1b2   : > { %1125 = vst [vmem:[%s289_s30] sm:$0x1] %v987_v20  ;;  %v1120_v54 = vadd.f32 %v1119_v5, %v1118_v63 }
 0x1b3   : > { %1976 = shalt.err (!%p1973_p8)
}
 0x1b4   : > { %1780 = dma.vmem_to_hbm [thread:$0]  (%p2184_p5), %s1177_s7, 16, %s1179_s8, %s1143_s21   ;;  %1126 = vst [vmem:[%s295_s25] sm:$0x1] %v1120_v54 }
 0x1b5   : > { %s1991_s10 = sshra.s32 %s1192_s24, 4  ;;  %s1997_s29 = scalar_lea.hbm %s2794_s5, 2  ;;  %s1992_s10 = int_to_ptr.hbm [resolvable:$true] %s1991_s10 }
 0x1b6   : > { %s1993_s11 = scalar_lea.hbm %s1992_s10, 1  ;;  %p1998_p0 = scmp.lt.s32.totalorder %s1992_s10, %s2794_s5 }
 0x1b7   : > { %p1994_p10 = scmp.ne.s32.totalorder %s1992_s10, %s1993_s11  ;;  %p1999_p3 = scmp.lt.s32.totalorder %s1997_s29, %s1993_s11 }
 0x1b9   : > { %p1995_p12 = pnand %p1994_p10, %p2184_p5  ;;  %p2000_p7 = por %p1999_p3, %p1998_p0 }
 0x1bb   : > { %p1996_p13 = pneg %p1995_p12 }
 0x1bd   : > { %p2001_p9 = pnand %p2000_p7, %p1996_p13 }
 0x1bf   : > { %2004 = shalt.err (!%p2001_p9)
}
 0x1c0   : > { %1781 = dma.vmem_to_hbm [thread:$0]  (%p2184_p5), %s1190_s15, 16, %s1192_s24, %s1143_s21  }
 0x1c1 PF: > { %s2812_s7 = sld [smem:[#allocation15_spill]]  ;;  %s1203_s8 = sand.u32 1, %s2047_s18  }
 0x1c2   : > { %p1794_p2 = pnand %p1343_p11, %p2151_p6  ;;  %s1204_s25 = scalar_lea.sflag [#allocation4], %s1203_s8 }
 0x1c4   : > { %p1795_p1 = pneg %p1794_p2 }
 0x1c6   : > { %2038 = dma.done.wait (%p1795_p1), %s1204_s25, 4096  }
 0x1c7   : > { %2040 = vsyncadd (%p1795_p1), %s1204_s25, 4294963200  ;;  %s2813_s1 = sadd.s32 4294967294, %s2812_s7  }
 0x1c8   : > { %s1213_s14 = sand.u32 1, %s2813_s1  }
 0x1c9   : > { %s1214_s12 = scalar_lea.sflag [#allocation9], %s1213_s14 }
 0x1ca   : > { %2042 = dma.done.wait (%p1795_p1), %s1214_s12, 32  }
 0x1cb   : > { %2044 = vsyncadd (%p1795_p1), %s1214_s12, 4294967264  ;;  %s26_s23 = sadd.s32 1, %s2812_s7   ;;  %s2814_s27 = sld [smem:[#allocation16_spill]] }
 0x1cc   : > { %p23_p5 = scmp.ge.s32.totalorder %s26_s23, 4   ;;  %s2815_s18 = smov %s2051_s19 }
 0x1cd   : > { %s2816_s19 = smov %s2055_s20  ;;  %s2817_s20 = smov %s2193_s28 }
 0x1ce   : > { %s2818_s21 = smov %s2063_s22  ;;  %25 = sbr.rel (!%p23_p5) target bundleno = 11 (0xb), region = 121 }
 0x1d1   : > { %s2819_s22 = smov %s2814_s27 }
 0x1d3   :  { %1228 = vsyncpa [#allocation3], 1 }
 0x1d4   :  { %1230 = vsyncpa [#allocation3 + $0x1], 1 }
 0x1d5   :  { %1231 = vsyncpa [#allocation6], 1 }
 0x1d6   :  { %1232 = vsyncpa [#allocation4], 1 }
 0x1d7   :  { %1234 = vsyncpa [#allocation4 + $0x1], 1 }
 0x1d8   :  { %1235 = vsyncpa [#allocation9], 1 }
 0x1d9   :  { %1237 = vsyncpa [#allocation9 + $0x1], 1 }

</bundles_post_ra>
